<compile_context>
chip_gen: v5e
topology: v5e:2x2
jax: 0.10.0
libtpu: 0.0.40
codegen_flags: <defaults>
</compile_context>

<pallas_src>
import jax
import jax.numpy as jnp
from jax.experimental import pallas as pl
from jax.experimental.pallas import tpu as pltpu


# ----------------------------------------------------------------------------- kernels
def _linear_kernel(x_ref, w_ref, o_ref):
    # x_ref: (tm, tk)  w_ref: (tk, tn)  o_ref: (tm, tn) f32, resident across k
    k = pl.program_id(2)

    @pl.when(k == 0)
    def _():
        o_ref[...] = jnp.zeros_like(o_ref)

    o_ref[...] += jnp.dot(x_ref[...], w_ref[...], preferred_element_type=jnp.float32)


def _linear_bias_kernel(x_ref, w_ref, b_ref, o_ref):
    k = pl.program_id(2)

    @pl.when(k == 0)
    def _():
        o_ref[...] = jnp.zeros_like(o_ref)

    o_ref[...] += jnp.dot(x_ref[...], w_ref[...], preferred_element_type=jnp.float32)

    @pl.when(k == pl.num_programs(2) - 1)
    def _():
        o_ref[...] += b_ref[...]  # (1, tn) broadcasts over (tm, tn)


def _round_up(x: int, m: int) -> int:
    return ((x + m - 1) // m) * m


def linear_pallas(x, weight_t, bias=None, *, tm_max=256, tn_max=256, tk_max=512):
    """y = x @ weight_t (+ bias).  weight_t is the PRE-TRANSPOSED weight (K, N)."""
    K, N = weight_t.shape
    lead = x.shape[:-1]
    assert x.shape[-1] == K
    x2d = x.reshape(-1, K)
    M = x2d.shape[0]

    # bounded, hardware-friendly tiles; arbitrary M/N/K handled via zero padding
    tm = min(tm_max, _round_up(M, 8))
    tn = min(tn_max, _round_up(N, 128))
    tk = min(tk_max, _round_up(K, 128))
    Mp, Np, Kp = _round_up(M, tm), _round_up(N, tn), _round_up(K, tk)

    if Mp != M or Kp != K:
        x2d = jnp.pad(x2d, ((0, Mp - M), (0, Kp - K)))
    w_p = weight_t
    if Kp != K or Np != N:
        w_p = jnp.pad(weight_t, ((0, Kp - K), (0, Np - N)))

    grid = (Mp // tm, Np // tn, Kp // tk)

    x_bytes = x2d.dtype.itemsize
    w_bytes = w_p.dtype.itemsize
    cost = pl.CostEstimate(
        flops=2 * Mp * Np * Kp,
        transcendentals=0,
        bytes_accessed=Mp * Kp * x_bytes + Kp * Np * w_bytes + Mp * Np * 4,
    )
    # double-buffered inputs + resident f32 output block; keep well under the
    # scoped limit (and v7x's 64 MiB physical VMEM).
    vmem_need = 2 * (tm * tk * x_bytes + tk * tn * w_bytes) + 2 * tm * tn * 4
    if bias is not None:
        vmem_need += 2 * tn * 4
    vmem_limit = int(min(32 * 1024 * 1024, max(2 * vmem_need, 8 * 1024 * 1024)))

    in_specs = [
        pl.BlockSpec((tm, tk), lambda i, j, k: (i, k)),   # x tile
        pl.BlockSpec((tk, tn), lambda i, j, k: (k, j)),   # weight tile (K, N) layout
    ]
    operands = [x2d, w_p]
    if bias is None:
        kernel = _linear_kernel
    else:
        kernel = _linear_bias_kernel
        b_p = bias.astype(jnp.float32)
        if Np != N:
            b_p = jnp.pad(b_p, (0, Np - N))
        operands.append(b_p.reshape(1, Np))
        in_specs.append(pl.BlockSpec((1, tn), lambda i, j, k: (0, j)))

    y = pl.pallas_call(
        kernel,
        out_shape=jax.ShapeDtypeStruct((Mp, Np), jnp.float32),
        grid_spec=pltpu.PrefetchScalarGridSpec(
            num_scalar_prefetch=0,
            grid=grid,
            in_specs=in_specs,
            out_specs=pl.BlockSpec((tm, tn), lambda i, j, k: (i, j)),
        ),
        compiler_params=pltpu.CompilerParams(
            dimension_semantics=("parallel", "parallel", "arbitrary"),
            vmem_limit_bytes=vmem_limit,
        ),
        cost_estimate=cost,
    )(*operands)

    if Mp != M or Np != N:
        y = y[:M, :N]
    return y.reshape(*lead, N)


# ----------------------------------------------------------------------------- modules
def _xavier(key, out_f, in_f):
    std = (2.0 / (in_f + out_f)) ** 0.5
    return jax.random.normal(key, (out_f, in_f), jnp.float32) * std


class Args:
    """Mirror of ModelArgs' custom __init__ (fields the MoE actually uses)."""

    def __init__(self, n_head, d_model, d_head, d_inner, seq_len,
                 n_routed_experts=4, n_shared_experts=1, n_activated_experts=1):
        self.dim = d_model
        self.inter_dim = d_inner
        self.moe_inter_dim = d_inner // n_routed_experts
        self.n_routed_experts = n_routed_experts
        self.n_shared_experts = n_shared_experts
        self.n_activated_experts = n_activated_experts
        self.n_expert_groups = 1
        self.n_limited_groups = 1
        self.score_func = "softmax"
        self.route_scale = 1.0


class GatePallas:
    def __init__(self, args, key):
        self.dim = args.dim
        self.topk = args.n_activated_experts
        self.score_func = args.score_func
        self.route_scale = args.route_scale
        # TODO(synk): fp8 / bf16 weight streaming path (act_quant / fp8_gemm) not
        # exercised -- module weights are fp32 (weight.element_size() > 1 branch).
        self.weight_t = _xavier(key, args.n_routed_experts, args.dim).T  # (dim, E)
        self.bias = jnp.zeros((args.n_routed_experts,), jnp.float32)

    def __call__(self, x2d):
        scores = linear_pallas(x2d, self.weight_t)
        if self.score_func == "softmax":
            scores = jax.nn.softmax(scores.astype(jnp.float32), axis=-1)
        else:
            scores = jax.nn.sigmoid(scores)
        original_scores = scores
        scores = scores + self.bias
        # TODO(synk): grouped routing (n_expert_groups > 1) not implemented; config uses 1 group.
        _, indices = jax.lax.top_k(scores, self.topk)
        weights = jnp.take_along_axis(original_scores, indices, axis=-1)
        if self.score_func == "sigmoid":
            weights = weights / weights.sum(axis=-1, keepdims=True)
        weights = weights * self.route_scale
        return weights.astype(x2d.dtype), indices


class GatedMLPPallas:
    """Expert / shared-expert MLP: w2(silu(w1 x) * (w3 x)), w1 & w3 fused into one GEMM."""

    def __init__(self, dim, inter_dim, key):
        k1, k2, k3 = jax.random.split(key, 3)
        w1 = _xavier(k1, inter_dim, dim)
        w2 = _xavier(k2, dim, inter_dim)
        w3 = _xavier(k3, inter_dim, dim)
        self.inter_dim = inter_dim
        # pre-transpose once: (dim, 2*inter) slab so up-projection is one kernel call
        self.w13_t = jnp.concatenate([w1.T, w3.T], axis=1)
        self.w2_t = w2.T

    def __call__(self, x2d):
        h = linear_pallas(x2d, self.w13_t)
        g = jax.nn.silu(h[:, : self.inter_dim]) * h[:, self.inter_dim:]  # cheap VPU glue
        return linear_pallas(g, self.w2_t)


class MoEPallas:
    def __init__(self, args, key):
        self.dim = args.dim
        self.n_routed_experts = args.n_routed_experts
        kg, ks, *ke = jax.random.split(key, 2 + args.n_routed_experts)
        self.gate = GatePallas(args, kg)
        self.experts = [GatedMLPPallas(args.dim, args.moe_inter_dim, ke[i])
                        for i in range(args.n_routed_experts)]
        self.shared_experts = GatedMLPPallas(
            args.dim, args.n_shared_experts * args.moe_inter_dim, ks)

    def __call__(self, x):
        shape = x.shape
        x2d = x.reshape(-1, self.dim)
        weights, indices = self.gate(x2d)
        y = jnp.zeros_like(x2d)
        # TODO(synk): production MoE would gather tokens per expert (scalar-prefetch
        # grouped GEMM); here each expert runs densely and is masked by its routing
        # weight, which matches the reference forward numerics exactly.
        for i in range(self.n_routed_experts):
            wi = jnp.sum(jnp.where(indices == i, weights, 0.0), axis=-1)
            y = y + self.experts[i](x2d) * wi[:, None]
        z = self.shared_experts(x2d)
        return (y + z).reshape(shape)


# ----------------------------------------------------------------------------- reference
def moe_reference(moe, x):
    x2d = x.reshape(-1, moe.dim)
    g = moe.gate
    scores = jax.nn.softmax((x2d @ g.weight_t).astype(jnp.float32), axis=-1)
    orig = scores
    scores = scores + g.bias
    _, idx = jax.lax.top_k(scores, g.topk)
    w = jnp.take_along_axis(orig, idx, axis=-1).astype(x2d.dtype) * g.route_scale
    y = jnp.zeros_like(x2d)
    for i, e in enumerate(moe.experts):
        wi = jnp.sum(jnp.where(idx == i, w, 0.0), axis=-1)
        h = x2d @ e.w13_t
        a = jax.nn.silu(h[:, : e.inter_dim]) * h[:, e.inter_dim:]
        y = y + (a @ e.w2_t) * wi[:, None]
    se = moe.shared_experts
    h = x2d @ se.w13_t
    a = jax.nn.silu(h[:, : se.inter_dim]) * h[:, se.inter_dim:]
    z = a @ se.w2_t
    return (y + z).reshape(x.shape)


if __name__ == "__main__":
    key = jax.random.PRNGKey(0)
    kx, kp, kb, kbx = jax.random.split(key, 4)

    # small MoE: batch=2, seq=8, dim=32, inter=64 -> moe_inter_dim=16, 4 experts, top-2
    args = Args(n_head=2, d_model=32, d_head=16, d_inner=64, seq_len=8,
                n_routed_experts=4, n_shared_experts=1, n_activated_experts=2)
    moe = MoEPallas(args, kp)

    x = jax.random.normal(kx, (2, 8, args.dim), jnp.float32)

    y = jax.block_until_ready(moe(x))
    y_ref = moe_reference(moe, x)
    assert y.shape == x.shape
    assert jnp.allclose(y, y_ref, atol=5e-4, rtol=5e-4), float(jnp.max(jnp.abs(y - y_ref)))

    # also exercise the fused-bias epilogue path of the linear kernel
    wb = _xavier(kb, 48, args.dim)
    bb = jax.random.normal(kbx, (48,), jnp.float32) * 0.1
    yb = jax.block_until_ready(linear_pallas(x, wb.T, bb))
    yb_ref = jnp.einsum("bsi,oi->bso", x, wb) + bb
    assert jnp.allclose(yb, yb_ref, atol=5e-4, rtol=5e-4)

    print("KERNEL_OK")
</pallas_src>

<mosaic_0001>
module attributes {stable_mosaic.version = 11 : i64} {
  func.func @_linear_kernel(%arg0: i32, %arg1: i32, %arg2: i32, %arg3: memref<16x128xf32, #tpu.memory_space<vmem>>, %arg4: memref<128x128xf32, #tpu.memory_space<vmem>>, %arg5: memref<16x128xf32, #tpu.memory_space<vmem>>) attributes {dimension_semantics = [#tpu.dimension_semantics<parallel>, #tpu.dimension_semantics<parallel>, #tpu.dimension_semantics<arbitrary>], iteration_bounds = array<i64: 1, 1, 1>, scalar_prefetch = 0 : i64, scratch_operands = 0 : i64, tpu.core_type = #tpu.core_type<tc>, window_params = [{transform_indices = @transform_0, window_bounds = array<i64: 16, 128>}, {transform_indices = @transform_1, window_bounds = array<i64: 128, 128>}, {transform_indices = @transform_2, window_bounds = array<i64: 16, 128>}]} {
    %c0_i32 = arith.constant 0 : i32
    %0 = arith.cmpi eq, %arg2, %c0_i32 : i32
    %1 = arith.extui %0 : i1 to i32
    %c0_i32_0 = arith.constant 0 : i32
    %2 = arith.cmpi ne, %1, %c0_i32_0 : i32
    scf.if %2 {
      %cst_8 = arith.constant 0.000000e+00 : f32
      %9 = vector.broadcast %cst_8 : f32 to vector<16x128xf32>
      %c0_9 = arith.constant 0 : index
      %c0_10 = arith.constant 0 : index
      %10 = vector.load %arg5[%c0_9, %c0_10] : memref<16x128xf32, #tpu.memory_space<vmem>>, vector<16x128xf32>
      tpu.vector_store %arg5[%c0_9, %c0_10], %9 {strides = array<i32>} : memref<16x128xf32, #tpu.memory_space<vmem>>, vector<16x128xf32>,
    } else {
    }
    %c0 = arith.constant 0 : index
    %c0_1 = arith.constant 0 : index
    %3 = vector.load %arg5[%c0, %c0_1] : memref<16x128xf32, #tpu.memory_space<vmem>>, vector<16x128xf32>
    %c0_2 = arith.constant 0 : index
    %c0_3 = arith.constant 0 : index
    %4 = vector.load %arg3[%c0_2, %c0_3] : memref<16x128xf32, #tpu.memory_space<vmem>>, vector<16x128xf32>
    %c0_4 = arith.constant 0 : index
    %c0_5 = arith.constant 0 : index
    %5 = vector.load %arg4[%c0_4, %c0_5] : memref<128x128xf32, #tpu.memory_space<vmem>>, vector<128x128xf32>
    %cst = arith.constant dense<0.000000e+00> : vector<16x128xf32>
    %6 = tpu.matmul %4, %5, %cst {dimension_numbers = #tpu.dot_dimension_numbers<[1], [0], [0], [1], [0, 0, 1, 1], [], []>} : vector<16x128xf32>, vector<128x128xf32>, vector<16x128xf32> -> vector<16x128xf32>
    %7 = arith.addf %3, %6 : vector<16x128xf32>
    %c0_6 = arith.constant 0 : index
    %c0_7 = arith.constant 0 : index
    %8 = vector.load %arg5[%c0_6, %c0_7] : memref<16x128xf32, #tpu.memory_space<vmem>>, vector<16x128xf32>
    tpu.vector_store %arg5[%c0_6, %c0_7], %7 {strides = array<i32>} : memref<16x128xf32, #tpu.memory_space<vmem>>, vector<16x128xf32>,
    return
  }
  func.func @transform_0(%arg0: i32, %arg1: i32, %arg2: i32) -> (i32, i32) {
    %c0_i32 = arith.constant 0 : i32
    return %arg0, %arg2 : i32, i32
  }
  func.func @transform_1(%arg0: i32, %arg1: i32, %arg2: i32) -> (i32, i32) {
    %c0_i32 = arith.constant 0 : i32
    return %arg2, %arg1 : i32, i32
  }
  func.func @transform_2(%arg0: i32, %arg1: i32, %arg2: i32) -> (i32, i32) {
    %c0_i32 = arith.constant 0 : i32
    return %arg0, %arg1 : i32, i32
  }
}

</mosaic_0001>

<bundles_post_ra>
// kernel: tpu_custom_call.1
= control target key start
LH: loop header
LB: loop body
LE: loop exit
PB: predicated region body
PF: predicated region fallthrough
CT: control target
= control target key end

     0   :  { %7 = vsyncpa [#allocation3], 0  ;;  %s255_s0 = inlined_call_operand.hbm [shape: f32[16,128], index: 0, kind: input, shape index: {}]   ;;  %s256_s1 = inlined_call_operand.hbm [shape: f32[128,128], index: 1, kind: input, shape index: {}]   ;;  %s257_s2 = inlined_call_operand.hbm [shape: f32[16,128], index: 2, kind: output, shape index: {}]  }
   0x1   :  { %8 = vsyncpa [#allocation6], 0 }
   0x2   :  { %9 = vsyncpa [#allocation4], 0  ;;  %s14_s11 = sshll.u32 %s255_s0, 4  ;;  %s217_s12 = smov [#allocation2]   ;;  %s15_s11 = int_to_ptr.hbm [resolvable:$true] %s14_s11 }
   0x3   :  { %s16_s13 = sshll.u32 %s217_s12, 4  ;;  %s27_s16 = sshll.u32 %s256_s1, 4  ;;  %s17_s13 = int_to_ptr.vmem [resolvable:$true] %s16_s13  ;;  %s28_s16 = int_to_ptr.hbm [resolvable:$true] %s27_s16 }
   0x4   :  { %s218_s17 = smov 128   ;;  %s219_s18 = smov 8  }
   0x5   :  { %22 = dma.hbm_to_vmem [thread:$0]  %s15_s11, 256, %s17_s13, [#allocation3], %s218_s17, %s218_s17, %s219_s18  }
   0x6   :  { %s220_s19 = smov [#allocation5]  }
   0x7   :  { %s29_s20 = sshll.u32 %s220_s19, 4  ;;  %s30_s20 = int_to_ptr.vmem [resolvable:$true] %s29_s20 }
   0x8   :  { %35 = dma.hbm_to_vmem [thread:$0]  %s28_s16, 2048, %s30_s20, [#allocation6], %s218_s17, %s218_s17, %s219_s18  }
   0x9   :  { %211 = dma.done.wait [#allocation3], 256  }
   0xa   :  { %212 = vsyncadd [#allocation3], 4294967040 }
   0xb   :  { %213 = dma.done.wait [#allocation6], 2048  }
   0xc   :  { %214 = vsyncadd [#allocation6], 4294965248  ;;  %v69_v0 = vld [vmem:[#allocation5 + $0x78] sm:$0xff]  ;;  %v68_v1 = vld [vmem:[#allocation5 + $0x70] sm:$0xff]  ;;  %s221_s0 = smov [#allocation7]   ;;  %s103_s23 = sshll.u32 %s257_s2, 4  ;;  %s104_s23 = int_to_ptr.hbm [resolvable:$true] %s103_s23 }
   0xd   :  { %70 = vmatpush.msra.mxu0 %v69_v0  ;;  %117 = vmatpush.msra.mxu1 %v69_v0  ;;  %v67_v2 = vld [vmem:[#allocation5 + $0x68] sm:$0xff]  ;;  %v66_v3 = vld [vmem:[#allocation5 + $0x60] sm:$0xff]  ;;  %v65_v4 = vld [vmem:[#allocation5 + $0x58] sm:$0xff]  ;;  %s101_s1 = sshll.u32 %s221_s0, 4  ;;  %s102_s1 = int_to_ptr.vmem [resolvable:$true] %s101_s1 }
   0xe   :  { %v64_v5 = vld [vmem:[#allocation5 + $0x50] sm:$0xff]  ;;  %v63_v6 = vld [vmem:[#allocation5 + $0x48] sm:$0xff]  ;;  %v62_v7 = vld [vmem:[#allocation5 + $0x40] sm:$0xff] }
   0xf   :  { %71 = vmatpush.msra.mxu0 %v68_v1  ;;  %118 = vmatpush.msra.mxu1 %v68_v1  ;;  %v61_v8 = vld [vmem:[#allocation5 + $0x38] sm:$0xff]  ;;  %v60_v9 = vld [vmem:[#allocation5 + $0x30] sm:$0xff]  ;;  %v59_v10 = vld [vmem:[#allocation5 + $0x28] sm:$0xff] }
  0x10   :  { %v58_v11 = vld [vmem:[#allocation5 + $0x20] sm:$0xff]  ;;  %v57_v12 = vld [vmem:[#allocation5 + $0x18] sm:$0xff]  ;;  %v56_v13 = vld [vmem:[#allocation5 + $0x10] sm:$0xff] }
  0x11   :  { %72 = vmatpush.msra.mxu0 %v67_v2  ;;  %119 = vmatpush.msra.mxu1 %v67_v2  ;;  %v55_v14 = vld [vmem:[#allocation5 + $0x8] sm:$0xff]  ;;  %v54_v15 = vld [vmem:[#allocation5] sm:$0xff]  ;;  %v52_v16 = vld [vmem:[#allocation2] sm:$0xff] }
  0x12   :  { %v53_v17 = vld [vmem:[#allocation2 + $0x8] sm:$0xff] }
  0x13   :  { %73 = vmatpush.msra.mxu0 %v66_v3  ;;  %120 = vmatpush.msra.mxu1 %v66_v3 }
  0x15   :  { %74 = vmatpush.msra.mxu0 %v65_v4  ;;  %121 = vmatpush.msra.mxu1 %v65_v4 }
  0x17   :  { %75 = vmatpush.msra.mxu0 %v64_v5  ;;  %122 = vmatpush.msra.mxu1 %v64_v5 }
  0x19   :  { %76 = vmatpush.msra.mxu0 %v63_v6  ;;  %123 = vmatpush.msra.mxu1 %v63_v6 }
  0x1b   :  { %77 = vmatpush.msra.mxu0 %v62_v7  ;;  %124 = vmatpush.msra.mxu1 %v62_v7 }
  0x1d   :  { %78 = vmatpush.msra.mxu0 %v61_v8  ;;  %125 = vmatpush.msra.mxu1 %v61_v8 }
  0x1f   :  { %79 = vmatpush.msra.mxu0 %v60_v9  ;;  %126 = vmatpush.msra.mxu1 %v60_v9 }
  0x21   :  { %80 = vmatpush.msra.mxu0 %v59_v10  ;;  %127 = vmatpush.msra.mxu1 %v59_v10 }
  0x23   :  { %81 = vmatpush.msra.mxu0 %v58_v11  ;;  %128 = vmatpush.msra.mxu1 %v58_v11 }
  0x25   :  { %82 = vmatpush.msra.mxu0 %v57_v12  ;;  %129 = vmatpush.msra.mxu1 %v57_v12 }
  0x27   :  { %83 = vmatpush.msra.mxu0 %v56_v13  ;;  %130 = vmatpush.msra.mxu1 %v56_v13 }
  0x29   :  { %84 = vmatpush.msra.mxu0 %v55_v14  ;;  %131 = vmatpush.msra.mxu1 %v55_v14 }
  0x2b   :  { %85 = vmatpush.msra.mxu0 %v54_v15  ;;  %132 = vmatpush.msra.mxu1 %v54_v15 }
  0x2c   :  { %86 = vmatmul.f32.vlgmr.msra.gmra.mxu0 %v52_v16  ;;  %89 = vmatmul.f32.vlgmr.msra.gmra.mxu1 %v53_v17 }
  0xa9   :  { %v87_v18 = vpop.f32.mrf.mxu0  ;;  %v90_v19 = vpop.f32.mrf.mxu1 }
  0xaa   :  { %95 = vst [vmem:[#allocation7] sm:$0xff] %v87_v18 }
  0xab   :  { %96 = vst [vmem:[#allocation7 + $0x8] sm:$0xff] %v90_v19 }
  0xac   :  { %109 = dma.vmem_to_hbm [thread:$0]  %s102_s1, 256, %s104_s23, [#allocation4], %s218_s17, %s218_s17, %s219_s18  }
  0xad   :  { %215 = dma.done.wait [#allocation4], 256  }
  0xae   :  { %216 = vsyncadd [#allocation4], 4294967040 }
  0xaf   :  { %114 = vsyncpa [#allocation3], 1 }
  0xb0   :  { %115 = vsyncpa [#allocation6], 1 }
  0xb1   :  { %116 = vsyncpa [#allocation4], 1 }

</bundles_post_ra>
